<compile_context>
chip_gen: v7x
topology: tpu7x:2x2x1
jax: 0.10.0
libtpu: 0.0.40
codegen_flags: <defaults>
</compile_context>

<pallas_src>
import math
from typing import NamedTuple, Optional

import jax
import jax.numpy as jnp
from jax import lax
from jax.experimental import pallas as pl
from jax.experimental.pallas import tpu as pltpu


# ----------------------------------------------------------------------------- helpers


def _round_up(x: int, m: int) -> int:
    return (x + m - 1) // m * m


def _sublane_pack(dtype) -> int:
    # Rows per packed vreg sublane group: f32 -> 8, bf16 -> 16, int8/fp8 -> 32.
    return {4: 8, 2: 16, 1: 32}.get(jnp.dtype(dtype).itemsize, 8)


def _vmem_capacity_bytes() -> int:
    """Per-core VMEM capacity; conservative 64 MiB (v7x) if introspection unavailable."""
    try:
        info = pltpu.get_tpu_info()
        cap = getattr(info, "vmem_capacity_bytes", None)
        if cap:
            return int(cap)
    except Exception:
        pass
    return 64 * 1024 * 1024


def _pick_nk_tiles(N: int, K: int, compute_dtype) -> tuple:
    """(tn, tk) depend only on (N, K, dtype) so weight prep and forward always agree."""
    cb = jnp.dtype(compute_dtype).itemsize
    if cb >= 4:          # f32 compute: smaller tiles (footprint & v7x VMEM)
        tn_cap, tk_cap = 1024, 512
    else:                # bf16 / fp8: big tiles -> ~683 flops/byte, MXU-bound on v6e/v7x
        tn_cap, tk_cap = 2048, 1024
    tn = min(tn_cap, _round_up(N, 128))
    tk = min(tk_cap, _round_up(K, 128))
    return tn, tk


def _pick_m_tile(M: int, compute_dtype) -> int:
    cb = jnp.dtype(compute_dtype).itemsize
    tm_cap = 512 if cb >= 4 else 1024
    return min(tm_cap, _round_up(M, _sublane_pack(compute_dtype)))


# ----------------------------------------------------------------------------- kernel


def _row_parallel_linear_kernel(x_ref, w_ref, b_ref, o_ref, acc_ref):
    # x_ref: (tm, tk)   w_ref: (tk, tn)   b_ref: (1, tn) f32   o_ref: (tm, tn)
    # acc_ref: (tm, tn) f32 VMEM scratch, persistent across the K grid axis.
    k = pl.program_id(2)

    @pl.when(k == 0)
    def _init():
        acc_ref[...] = jnp.zeros_like(acc_ref)

    # Canonical A @ B (weight pre-stored as (K, N)): MXU-native RHS layout, f32 accumulate.
    acc_ref[...] += jnp.dot(x_ref[...], w_ref[...], preferred_element_type=jnp.float32)

    @pl.when(k == pl.num_programs(2) - 1)
    def _finalize():
        # Bias added exactly once, on the f32 accumulator, then cast to the output dtype.
        o_ref[...] = (acc_ref[...] + b_ref[...]).astype(o_ref.dtype)


# ----------------------------------------------------------------------------- params


class RowParallelLinearParams(NamedTuple):
    weight_kn: jax.Array      # (Kp, Np), compute dtype, pre-transposed + pre-padded
    bias_1n: jax.Array        # (1, Np), float32
    input_size: int           # K  (per-partition input size)
    output_size: int          # N
    tn: int
    tk: int
    compute_dtype: object     # numpy dtype


def prepare_row_parallel_params(weight, bias=None, compute_dtype=jnp.bfloat16):
    """One-time parameter layout (done at 'init', not per forward call):
       weight (N, K) -> (Kp, Np) in compute dtype; bias (N,) -> (1, Np) float32."""
    N, K = weight.shape
    cdt = jnp.dtype(compute_dtype)
    tn, tk = _pick_nk_tiles(N, K, cdt)
    Np, Kp = _round_up(N, tn), _round_up(K, tk)

    w_kn = jnp.transpose(weight).astype(cdt)          # (K, N), MXU-native RHS layout
    if (Kp, Np) != (K, N):
        w_kn = jnp.pad(w_kn, ((0, Kp - K), (0, Np - N)))

    if bias is None:
        b_1n = jnp.zeros((1, Np), jnp.float32)
    else:
        b_1n = bias.reshape(1, N).astype(jnp.float32)
        if Np != N:
            b_1n = jnp.pad(b_1n, ((0, 0), (0, Np - N)))

    return RowParallelLinearParams(w_kn, b_1n, K, N, tn, tk, cdt)


def init_row_parallel_linear_params(key, input_size, output_size,
                                    compute_dtype=jnp.bfloat16):
    """Mirror RowParallelLinear.__init__ (world_size=1):
       weight (output_size, input_size_per_partition) via xavier_normal_; bias zeroed."""
    std = math.sqrt(2.0 / (input_size + output_size))   # xavier normal, gain=1
    weight = std * jax.random.normal(key, (output_size, input_size), dtype=jnp.float32)
    bias = jnp.zeros((output_size,), dtype=jnp.float32)
    params = prepare_row_parallel_params(weight, bias, compute_dtype=compute_dtype)
    return params, weight, bias


# ----------------------------------------------------------------------------- forward


def row_parallel_linear(x, params: RowParallelLinearParams, out_dtype=None):
    """Forward of RowParallelLinear (world_size=1, input_is_parallel, skip_bias_add=False).

    Args:
      x:      (..., input_size) activations (Megatron layout: (seq, batch, hidden_in)).
      params: RowParallelLinearParams from prepare_row_parallel_params().
      out_dtype: output dtype; defaults to x.dtype.  NOTE: with the default bf16 compute
                 dtype, results match an f32 reference at bf16-input precision.
    Returns:
      (output, output_bias) matching the PyTorch module (output_bias is None).
    """
    *lead, K = x.shape
    assert K == params.input_size, (K, params.input_size)
    if out_dtype is None:
        out_dtype = x.dtype
    cdt = params.compute_dtype

    M = 1
    for d in lead:
        M *= d
    N = params.output_size
    Kp, Np = params.weight_kn.shape
    tn, tk = params.tn, params.tk
    tm = _pick_m_tile(M, cdt)
    Mp = _round_up(M, tm)

    x2d = x.reshape(M, K).astype(cdt)
    # Typical Megatron dims are multiples of the tiles -> this pad is a static no-op.
    if (Mp, Kp) != (M, K):
        x2d = jnp.pad(x2d, ((0, Mp - M), (0, Kp - K)))

    # Megacore: if both parallel axes collapse to one tile (small-M decode), split N so
    # both TensorCores (v7x) get work.  Halved tn still divides the pre-padded Np.
    if Mp // tm == 1 and Np // tn == 1:
        cand = tn // 2
        if cand >= 256 and cand % 128 == 0 and Np % cand == 0:
            tn = cand

    grid = (Mp // tm, Np // tn, Kp // tk)

    cb = jnp.dtype(cdt).itemsize
    ob = jnp.dtype(out_dtype).itemsize
    # Double-buffered X/W/bias/out tiles + f32 accumulator.
    footprint = (2 * (tm * tk + tk * tn) * cb + 2 * tn * 4
                 + 2 * tm * tn * ob + tm * tn * 4)
    cap = _vmem_capacity_bytes()
    hard_cap = max(32 << 20, cap * 3 // 4)       # ~48 MiB on 64 MiB parts, ~96 MiB on 128 MiB
    vmem_limit = int(min(hard_cap, max(footprint + (8 << 20), 32 << 20)))

    # Honest streamed traffic: X re-read per N tile, W re-read per M tile.
    cost = pl.CostEstimate(
        flops=2 * M * N * K,
        transcendentals=0,
        bytes_accessed=int(Mp * Kp * cb * (Np // tn)
                           + Kp * Np * cb * (Mp // tm)
                           + Mp * Np * ob + Np * 4),
    )

    out2d = pl.pallas_call(
        _row_parallel_linear_kernel,
        out_shape=jax.ShapeDtypeStruct((Mp, Np), out_dtype),
        grid_spec=pltpu.PrefetchScalarGridSpec(
            num_scalar_prefetch=0,
            grid=grid,
            in_specs=[
                pl.BlockSpec((tm, tk), lambda i, j, k: (i, k)),   # X tiles stream over K
                pl.BlockSpec((tk, tn), lambda i, j, k: (k, j)),   # W (K,N) tiles stream over K
                # TODO(synk): if small-M decode is still DMA-latency bound, deepen W
                # pipelining with pipeline_mode=pl.Buffered(3) on the W BlockSpec.
                pl.BlockSpec((1, tn), lambda i, j, k: (0, j)),    # bias strip per N tile
            ],
            out_specs=pl.BlockSpec((tm, tn), lambda i, j, k: (i, j)),
            scratch_shapes=[pltpu.VMEM((tm, tn), jnp.float32)],
        ),
        compiler_params=pltpu.CompilerParams(
            dimension_semantics=("parallel", "parallel", "arbitrary"),
            vmem_limit_bytes=vmem_limit,
        ),
        cost_estimate=cost,
    )(x2d, params.weight_kn, params.bias_1n)

    out2d = out2d[:M, :N] if (Mp, Np) != (M, N) else out2d
    output = out2d.reshape(*lead, N)
    output_bias = None  # skip_bias_add=False
    # TODO(synk): reduce_from_tensor_model_parallel_region is an identity at world_size=1;
    # a real TP setup would add a ring all-reduce via pltpu.make_async_remote_copy.
    return output, output_bias


# ----------------------------------------------------------------------------- demo


if __name__ == "__main__":
    # Small shapes: seq=8, batch=2, input_size=32, output_size=32 (Megatron layout S,B,H).
    seq, batch, input_size, output_size = 8, 2, 32, 32

    key = jax.random.PRNGKey(0)
    kx, kw = jax.random.split(key)

    x = jax.random.normal(kx, (seq, batch, input_size), dtype=jnp.float32)

    # --- default path: bf16 compute, f32 accumulation --------------------------------
    params_bf16, weight, bias = init_row_parallel_linear_params(
        kw, input_size, output_size, compute_dtype=jnp.bfloat16)
    out, out_bias = row_parallel_linear(x, params_bf16)
    out = jax.block_until_ready(out)

    assert out.shape == (seq, batch, output_size)
    assert out_bias is None
    # Reference at matching (bf16-input, f32-accumulate) precision.
    xb = x.astype(jnp.bfloat16).astype(jnp.float32)
    wb = weight.astype(jnp.bfloat16).astype(jnp.float32)
    ref_bf16 = jnp.einsum("sbk,nk->sbn", xb, wb,
                          precision=lax.Precision.HIGHEST) + bias
    assert jnp.allclose(out, ref_bf16, atol=2e-2, rtol=2e-2), "bf16-path mismatch"

    # --- f32 compute path: tight check against f32 reference -------------------------
    params_f32 = prepare_row_parallel_params(weight, bias, compute_dtype=jnp.float32)
    out32, _ = row_parallel_linear(x, params_f32)
    out32 = jax.block_until_ready(out32)
    ref_f32 = jnp.einsum("sbk,nk->sbn", x, weight,
                         precision=lax.Precision.HIGHEST) + bias
    assert jnp.allclose(out32, ref_f32, atol=1e-3, rtol=1e-3), "f32-path mismatch"

    print("KERNEL_OK")
</pallas_src>

<mosaic_0001>
module attributes {stable_mosaic.version = 11 : i64} {
  func.func @_row_parallel_linear_kernel(%arg0: i32, %arg1: i32, %arg2: i32, %arg3: memref<16x128xbf16, #tpu.memory_space<vmem>>, %arg4: memref<128x128xbf16, #tpu.memory_space<vmem>>, %arg5: memref<1x128xf32, #tpu.memory_space<vmem>>, %arg6: memref<16x128xf32, #tpu.memory_space<vmem>>, %arg7: memref<16x128xf32, #tpu.memory_space<vmem>>) attributes {dimension_semantics = [#tpu.dimension_semantics<parallel>, #tpu.dimension_semantics<parallel>, #tpu.dimension_semantics<arbitrary>], iteration_bounds = array<i64: 1, 1, 1>, scalar_prefetch = 0 : i64, scratch_operands = 1 : i64, tpu.core_type = #tpu.core_type<tc>, window_params = [{transform_indices = @transform_0, window_bounds = array<i64: 16, 128>}, {transform_indices = @transform_1, window_bounds = array<i64: 128, 128>}, {transform_indices = @transform_2, window_bounds = array<i64: 1, 128>}, {transform_indices = @transform_3, window_bounds = array<i64: 16, 128>}]} {
    %c0_i32 = arith.constant 0 : i32
    %0 = arith.cmpi eq, %arg2, %c0_i32 : i32
    %1 = arith.extui %0 : i1 to i32
    %c0_i32_0 = arith.constant 0 : i32
    %2 = arith.cmpi ne, %1, %c0_i32_0 : i32
    scf.if %2 {
      %cst_10 = arith.constant 0.000000e+00 : f32
      %12 = vector.broadcast %cst_10 : f32 to vector<16x128xf32>
      %c0_11 = arith.constant 0 : index
      %c0_12 = arith.constant 0 : index
      %13 = vector.load %arg7[%c0_11, %c0_12] : memref<16x128xf32, #tpu.memory_space<vmem>>, vector<16x128xf32>
      tpu.vector_store %arg7[%c0_11, %c0_12], %12 {strides = array<i32>} : memref<16x128xf32, #tpu.memory_space<vmem>>, vector<16x128xf32>,
    } else {
    }
    %c0 = arith.constant 0 : index
    %c0_1 = arith.constant 0 : index
    %3 = vector.load %arg7[%c0, %c0_1] : memref<16x128xf32, #tpu.memory_space<vmem>>, vector<16x128xf32>
    %c0_2 = arith.constant 0 : index
    %c0_3 = arith.constant 0 : index
    %4 = vector.load %arg3[%c0_2, %c0_3] : memref<16x128xbf16, #tpu.memory_space<vmem>>, vector<16x128xbf16>
    %c0_4 = arith.constant 0 : index
    %c0_5 = arith.constant 0 : index
    %5 = vector.load %arg4[%c0_4, %c0_5] : memref<128x128xbf16, #tpu.memory_space<vmem>>, vector<128x128xbf16>
    %cst = arith.constant dense<0.000000e+00> : vector<16x128xf32>
    %6 = tpu.matmul %4, %5, %cst {dimension_numbers = #tpu.dot_dimension_numbers<[1], [0], [0], [1], [0, 0, 1, 1], [], []>} : vector<16x128xbf16>, vector<128x128xbf16>, vector<16x128xf32> -> vector<16x128xf32>
    %7 = arith.addf %3, %6 : vector<16x128xf32>
    %c0_6 = arith.constant 0 : index
    %c0_7 = arith.constant 0 : index
    %8 = vector.load %arg7[%c0_6, %c0_7] : memref<16x128xf32, #tpu.memory_space<vmem>>, vector<16x128xf32>
    tpu.vector_store %arg7[%c0_6, %c0_7], %7 {strides = array<i32>} : memref<16x128xf32, #tpu.memory_space<vmem>>, vector<16x128xf32>,
    %c0_i32_8 = arith.constant 0 : i32
    %9 = arith.cmpi eq, %arg2, %c0_i32_8 : i32
    %10 = arith.extui %9 : i1 to i32
    %c0_i32_9 = arith.constant 0 : i32
    %11 = arith.cmpi ne, %10, %c0_i32_9 : i32
    scf.if %11 {
      %c0_10 = arith.constant 0 : index
      %c0_11 = arith.constant 0 : index
      %12 = vector.load %arg7[%c0_10, %c0_11] : memref<16x128xf32, #tpu.memory_space<vmem>>, vector<16x128xf32>
      %c0_12 = arith.constant 0 : index
      %c0_13 = arith.constant 0 : index
      %13 = vector.load %arg5[%c0_12, %c0_13] : memref<1x128xf32, #tpu.memory_space<vmem>>, vector<1x128xf32>
      %14 = vector.broadcast %13 : vector<1x128xf32> to vector<16x128xf32>
      %15 = arith.addf %12, %14 : vector<16x128xf32>
      %c0_14 = arith.constant 0 : index
      %c0_15 = arith.constant 0 : index
      %16 = vector.load %arg6[%c0_14, %c0_15] : memref<16x128xf32, #tpu.memory_space<vmem>>, vector<16x128xf32>
      tpu.vector_store %arg6[%c0_14, %c0_15], %15 {strides = array<i32>} : memref<16x128xf32, #tpu.memory_space<vmem>>, vector<16x128xf32>,
    } else {
    }
    return
  }
  func.func @transform_0(%arg0: i32, %arg1: i32, %arg2: i32) -> (i32, i32) {
    %c0_i32 = arith.constant 0 : i32
    return %arg0, %arg2 : i32, i32
  }
  func.func @transform_1(%arg0: i32, %arg1: i32, %arg2: i32) -> (i32, i32) {
    %c0_i32 = arith.constant 0 : i32
    return %arg2, %arg1 : i32, i32
  }
  func.func @transform_2(%arg0: i32, %arg1: i32, %arg2: i32) -> (i32, i32) {
    %c0_i32 = arith.constant 0 : i32
    %c0_i32_0 = arith.constant 0 : i32
    return %c0_i32, %arg1 : i32, i32
  }
  func.func @transform_3(%arg0: i32, %arg1: i32, %arg2: i32) -> (i32, i32) {
    %c0_i32 = arith.constant 0 : i32
    return %arg0, %arg1 : i32, i32
  }
}

</mosaic_0001>

<bundles_post_ra>
// kernel: tpu_custom_call.1
= control target key start
LH: loop header
LB: loop body
LE: loop exit
PB: predicated region body
PF: predicated region fallthrough
CT: control target
= control target key end

     0   :  { %8 = vsyncpa [#allocation4], 0  ;;  %s400_s0 = inlined_call_operand.hbm [shape: bf16[16,128], index: 0, kind: input, shape index: {}]   ;;  %s401_s1 = inlined_call_operand.hbm [shape: bf16[128,128], index: 1, kind: input, shape index: {}]   ;;  %s402_s2 = inlined_call_operand.vmem [shape: f32[1,128], index: 2, kind: input, shape index: {}]   ;;  %s403_s3 = inlined_call_operand.hbm [shape: f32[16,128], index: 3, kind: output, shape index: {}]  }
   0x1   :  { %9 = vsyncpa [#allocation7], 0 }
   0x2   :  { %10 = vsyncpa [#allocation5], 0  ;;  %s332_s12 = smov [#allocation3]   ;;  %s260_s16 = scalar_lea.hbm %s400_s0, 128 }
   0x3   :  { %s16_s13 = sshll.u32 %s332_s12, 4  ;;  %p261_p0 = scmp.ne.s32.totalorder %s400_s0, %s260_s16  ;;  %s17_s13 = int_to_ptr.vmem [resolvable:$true] %s16_s13 }
   0x4   :  { %p264_p1 = scmp.lt.u32.totalorder %s260_s16, %s400_s0 }
   0x6   :  { %p266_p2 = pnand %p264_p1, %p261_p0 }
   0x8   :  { %269 = shalt.err (!%p266_p2)
}
   0x9   :  { %s270_s21 = scalar_lea.vmem %s17_s13, 128  ;;  %p275_p4 = scmp.lt.s32.totalorder %s17_s13, %s17_s13 }
   0xa   :  { %p271_p3 = scmp.ne.s32.totalorder %s17_s13, %s270_s21  ;;  %p276_p5 = scmp.lt.s32.totalorder %s270_s21, %s270_s21 }
   0xc   :  { %p277_p6 = por %p276_p5, %p275_p4 }
   0xe   :  { %p278_p7 = pnand %p277_p6, %p271_p3 }
  0x10   :  { %281 = shalt.err (!%p278_p7)
}
  0x11   :  { %s333_s22 = smov 64   ;;  %s334_s23 = smov 4  }
  0x12   :  { %22 = dma.hbm_to_vmem [thread:$0]  %s400_s0, 128, %s17_s13, [#allocation4], %s333_s22, %s333_s22, %s334_s23  }
  0x13   :  { %s335_s26 = smov [#allocation6]   ;;  %s282_s30 = scalar_lea.hbm %s401_s1, 1024 }
  0x14   :  { %s28_s27 = sshll.u32 %s335_s26, 4  ;;  %p283_p8 = scmp.ne.s32.totalorder %s401_s1, %s282_s30  ;;  %s29_s27 = int_to_ptr.vmem [resolvable:$true] %s28_s27 }
  0x15   :  { %p286_p9 = scmp.lt.u32.totalorder %s282_s30, %s401_s1 }
  0x17   :  { %p288_p10 = pnand %p286_p9, %p283_p8 }
  0x19   :  { %291 = shalt.err (!%p288_p10)
}
  0x1a   :  { %s292_s8 = scalar_lea.vmem %s29_s27, 1024  ;;  %p297_p12 = scmp.lt.s32.totalorder %s29_s27, %s29_s27 }
  0x1b   :  { %p293_p11 = scmp.ne.s32.totalorder %s29_s27, %s292_s8  ;;  %p298_p13 = scmp.lt.s32.totalorder %s292_s8, %s292_s8 }
  0x1d   :  { %p299_p0 = por %p298_p13, %p297_p12 }
  0x1f   :  { %p300_p1 = pnand %p299_p0, %p293_p11 }
  0x21   :  { %303 = shalt.err (!%p300_p1)
}
  0x22   :  { %34 = dma.hbm_to_vmem [thread:$0]  %s401_s1, 1024, %s29_s27, [#allocation7], %s333_s22, %s333_s22, %s334_s23  }
  0x23   :  { %326 = dma.done.wait [#allocation4], 128  }
  0x24   :  { %327 = vsyncadd [#allocation4], 4294967168 }
  0x25   :  { %328 = dma.done.wait [#allocation7], 1024  }
  0x26   :  { %329 = vsyncadd [#allocation7], 4294966272  ;;  %v336_v0 = vmov 0.0   ;;  %vm337_vm0 = vmmov 0   ;;  %v251_v1 = vld [vmem:[#allocation6] sm:$0xff]   ;;  %v252_v2 = vld [vmem:[#allocation6 + $0x8] sm:$0xff]  }
  0x27   :  { %222 = vmatprep.subr.bf16.mxu0 %v336_v0  ;;  %238 = vmatprep.mubr.msk.bf16.mxu0 %vm337_vm0, %v336_v0  ;;  %v253_v3 = vld [vmem:[#allocation6 + $0x10] sm:$0xff]   ;;  %v254_v4 = vld [vmem:[#allocation6 + $0x18] sm:$0xff]   ;;  %v255_v5 = vld [vmem:[#allocation6 + $0x20] sm:$0xff]   ;;  %s338_s11 = smov [#allocation8]  }
  0x28   :  { %223 = vmatpush3.bf16.msra.mxu0 %v251_v1  ;;  %v256_v6 = vld [vmem:[#allocation6 + $0x28] sm:$0xff]   ;;  %v257_v7 = vld [vmem:[#allocation6 + $0x30] sm:$0xff]   ;;  %v258_v8 = vld [vmem:[#allocation6 + $0x38] sm:$0xff]   ;;  %s190_s12 = sshll.u32 %s338_s11, 4  ;;  %s191_s12 = int_to_ptr.vmem [resolvable:$true] %s190_s12 }
  0x29   :  { %224 = vmatprep.subr.bf16.mxu0 %v336_v0  ;;  %v259_v9 = vld [vmem:[#allocation3] sm:$0xff]   ;;  %s304_s13 = scalar_lea.vmem %s191_s12, 256  ;;  %p309_p3 = scmp.lt.s32.totalorder %s191_s12, %s191_s12 }
  0x2a   :  { %v212_v10 = vld [vmem:[%s402_s2] ss:$0 sm:$0xff]  ;;  %p305_p2 = scmp.ne.s32.totalorder %s191_s12, %s304_s13  ;;  %p310_p4 = scmp.lt.s32.totalorder %s304_s13, %s304_s13 }
  0x2c   :  { %225 = vmatpush3.bf16.msra.mxu0 %v252_v2  ;;  %p311_p5 = por %p310_p4, %p309_p3 }
  0x2d   :  { %226 = vmatprep.subr.bf16.mxu0 %v336_v0 }
  0x2e   :  { %p312_p6 = pnand %p311_p5, %p305_p2 }
  0x30   :  { %227 = vmatpush3.bf16.msra.mxu0 %v253_v3 }
  0x31   :  { %228 = vmatprep.subr.bf16.mxu0 %v336_v0 }
  0x34   :  { %229 = vmatpush3.bf16.msra.mxu0 %v254_v4 }
  0x35   :  { %230 = vmatprep.subr.bf16.mxu0 %v336_v0 }
  0x38   :  { %231 = vmatpush3.bf16.msra.mxu0 %v255_v5 }
  0x39   :  { %232 = vmatprep.subr.bf16.mxu0 %v336_v0 }
  0x3c   :  { %233 = vmatpush3.bf16.msra.mxu0 %v256_v6 }
  0x3d   :  { %234 = vmatprep.subr.bf16.mxu0 %v336_v0 }
  0x40   :  { %235 = vmatpush3.bf16.msra.mxu0 %v257_v7 }
  0x41   :  { %236 = vmatprep.subr.bf16.mxu0 %v336_v0 }
  0x44   :  { %237 = vmatpush3.bf16.msra.mxu0 %v258_v8 }
  0x47   :  { %239 = vmatmul.mubr.bf16.vlgmr.msra.gmra.mrb[0].mxu0 %v259_v9 }
 0x11a   :  { %v158_v11 = vpop.f32.mrb[0].mxu0 }
 0x11b   :  { %v181_v12 = vadd.f32 %v212_v10, %v158_v11  ;;  %v240_v13 = vpop.f32.mrb[1].mxu0 }
 0x11c   :  { %v161_v14 = vpop.f32.mrb[2].mxu0 }
 0x11d   :  { %183 = vst [vmem:[#allocation8] sm:$0xff] %v181_v12  ;;  %v182_v15 = vadd.f32 %v212_v10, %v161_v14  ;;  %v241_v16 = vpop.f32.mrb[3].mxu0 }
 0x11f   :  { %184 = vst [vmem:[#allocation8 + $0x8] sm:$0xff] %v182_v15 }
 0x120   :  { %315 = shalt.err (!%p312_p6)
}
 0x121   :  { %s316_s15 = scalar_lea.hbm %s403_s3, 256 }
 0x122   :  { %p317_p7 = scmp.ne.s32.totalorder %s403_s3, %s316_s15  ;;  %p320_p8 = scmp.lt.u32.totalorder %s316_s15, %s403_s3 }
 0x124   :  { %p322_p9 = pnand %p320_p8, %p317_p7 }
 0x126   :  { %325 = shalt.err (!%p322_p9)
}
 0x127   :  { %s339_s20 = smov 128   ;;  %s340_s21 = smov 8  }
 0x128   :  { %196 = dma.vmem_to_hbm [thread:$0]  %s191_s12, 256, %s403_s3, [#allocation5], %s339_s20, %s339_s20, %s340_s21  }
 0x129   :  { %330 = dma.done.wait [#allocation5], 256  }
 0x12a   :  { %331 = vsyncadd [#allocation5], 4294967040 }
 0x12b   :  { %200 = vsyncpa [#allocation4], 1 }
 0x12c   :  { %201 = vsyncpa [#allocation7], 1 }
 0x12d   :  { %202 = vsyncpa [#allocation5], 1 }

</bundles_post_ra>
